<compile_context>
chip_gen: v7x
topology: tpu7x:2x2x1
jax: 0.10.0
libtpu: 0.0.40
codegen_flags: <defaults>
</compile_context>

<pallas_src>
import jax
import jax.numpy as jnp
from jax.experimental import pallas as pl
from jax.experimental.pallas import tpu as pltpu


def _round_up(x, m):
    return ((x + m - 1) // m) * m


def _cdiv(a, b):
    return -(-a // b)


# ----------------------------------------------------------------------------
# Kernels
# ----------------------------------------------------------------------------
def _ffn_kernel_resident(x_ref, w1_ref, b1_ref, w2_ref, b2_ref, o_ref):
    """Single hidden step: both weight matrices resident in VMEM."""
    xb = x_ref[...].astype(jnp.bfloat16)
    h = jnp.dot(xb, w1_ref[...], preferred_element_type=jnp.float32)
    h = jnp.maximum(h + b1_ref[...], 0.0)
    out = jnp.dot(h.astype(w2_ref.dtype), w2_ref[...],
                  preferred_element_type=jnp.float32)
    o_ref[...] = (out + b2_ref[...]).astype(o_ref.dtype)


def _ffn_kernel_streamed(x_ref, w1_ref, b1_ref, w2_ref, b2_ref, o_ref, acc_ref):
    """Hidden dim tiled: accumulate partial products of the second matmul.

    The last hidden step fuses its partial product directly into the output
    write (no extra accumulator store+reload on that step).
    """
    h_idx = pl.program_id(1)
    n_h = pl.num_programs(1)

    xb = x_ref[...].astype(jnp.bfloat16)
    h = jnp.dot(xb, w1_ref[...], preferred_element_type=jnp.float32)
    h = jnp.maximum(h + b1_ref[...], 0.0)
    partial = jnp.dot(h.astype(w2_ref.dtype), w2_ref[...],
                      preferred_element_type=jnp.float32)

    @pl.when(h_idx == 0)
    def _():
        acc_ref[...] = partial

    @pl.when(jnp.logical_and(h_idx > 0, h_idx < n_h - 1))
    def _():
        acc_ref[...] += partial

    @pl.when(h_idx == n_h - 1)
    def _():
        o_ref[...] = (acc_ref[...] + partial + b2_ref[...]).astype(o_ref.dtype)


# ----------------------------------------------------------------------------
# Wrapper
# ----------------------------------------------------------------------------
def _vmem_budget():
    """(physical_vmem_bytes, usable_budget_bytes) for the current chip."""
    try:
        phys = int(pltpu.get_tpu_info().vmem_capacity_bytes)
    except Exception:
        phys = 64 * 1024 * 1024  # conservative (v7x per-TC)
    # Leave headroom for Mosaic internal scratch/semaphores: never request the
    # full physical VMEM (critical on v7x, where physical is only 64 MiB).
    budget = min(int(phys * 0.82), phys - (8 << 20))
    return phys, max(budget, 8 << 20)


def feedforward(x, w1, b1, w2, b2, *, force_tm=None, force_th=None):
    """x: (B, T, C) -> (B, T, C).  Fused bf16 MLP on the MXU, f32 accumulation."""
    B, T, C = x.shape
    H = w1.shape[1]
    M = B * T
    out_dtype = x.dtype
    x_item = jnp.dtype(x.dtype).itemsize
    out_item = jnp.dtype(out_dtype).itemsize

    phys_vmem, budget = _vmem_budget()
    tm_cap = 1024 if phys_vmem >= (100 << 20) else 512
    tm_cap = min(tm_cap, _round_up(M, 8))

    # Hidden dim: keep tiles 128-lane aligned.  Pad H only when needed.
    if H <= 128 or H % 128 == 0:
        H_work = H
    else:
        H_work = _round_up(H, 128)

    def vmem_need(tm, th, resident):
        w = 2 * (C * th + th * C) * 2            # double-buffered bf16 weights
        b = 2 * (th + C) * 4                     # f32 biases
        xt = 2 * tm * C * x_item                 # double-buffered x tiles
        ot = 2 * tm * C * out_item               # double-buffered out tiles
        acc = 0 if resident else tm * C * 4      # f32 accumulator scratch
        return w + b + xt + ot + acc

    # --- tile selection -----------------------------------------------------
    if vmem_need(8, H_work, True) <= budget:
        # Resident weights: hidden axis collapses to one step.
        th = H_work
        tm = tm_cap
        while tm > 8 and vmem_need(tm, th, True) > budget:
            tm -= 8
    else:
        # Stream hidden tiles: largest multiple of 128 that DIVIDES H_work and
        # fits the budget alongside a modest row tile.
        tm_floor = min(256, _round_up(M, 8))
        th = H_work if H_work < 128 else 128
        for d in range(128, H_work + 1, 128):
            if H_work % d == 0 and vmem_need(tm_floor, d, False) <= budget:
                th = d
        tm = tm_cap
        while tm > 8 and vmem_need(tm, th, False) > budget:
            tm -= 8

    if force_th is not None:
        th = force_th
    if force_tm is not None:
        tm = _round_up(max(force_tm, 8), 8)
    elif _cdiv(M, tm) < 2 and M > 8:
        # Keep >= 2 tiles on the parallel M axis (v7x has 2 TensorCores/chip).
        tm = _round_up(_cdiv(M, 2), 8)

    n_m = _cdiv(M, tm)
    n_h = H_work // th

    # --- operand prep (weights -> bf16; activations cast on-VPU in-kernel) ---
    x2d = x.reshape(M, C)
    w1b = w1.astype(jnp.bfloat16)
    w2b = w2.astype(jnp.bfloat16)
    b1f = b1.reshape(1, H).astype(jnp.float32)
    b2f = b2.reshape(1, C).astype(jnp.float32)
    if H_work != H:
        w1b = jnp.pad(w1b, ((0, 0), (0, H_work - H)))
        b1f = jnp.pad(b1f, ((0, 0), (0, H_work - H)))
        w2b = jnp.pad(w2b, ((0, H_work - H), (0, 0)))

    # flops / bytes hint for the XLA scheduler (weights re-streamed per M tile
    # when the hidden axis is tiled).
    flops = 4 * M * C * H
    weight_reps = 1 if n_h == 1 else n_m
    bytes_accessed = (M * C * x_item
                      + weight_reps * (C * H_work + H_work * C) * 2
                      + H_work * 4 + C * 4
                      + M * C * out_item)

    need = vmem_need(tm, th, n_h == 1)
    vmem_limit = int(min(budget, max(2 * need, 16 << 20)))

    if n_h == 1:
        kernel = _ffn_kernel_resident
        dim_sem = ("parallel",)
        grid_spec = pltpu.PrefetchScalarGridSpec(
            num_scalar_prefetch=0,
            grid=(n_m,),
            in_specs=[
                pl.BlockSpec((tm, C), lambda i: (i, 0)),       # x rows
                pl.BlockSpec((C, H_work), lambda i: (0, 0)),   # W1 (resident)
                pl.BlockSpec((1, H_work), lambda i: (0, 0)),   # b1 (resident)
                pl.BlockSpec((H_work, C), lambda i: (0, 0)),   # W2 (resident)
                pl.BlockSpec((1, C), lambda i: (0, 0)),        # b2 (resident)
            ],
            out_specs=pl.BlockSpec((tm, C), lambda i: (i, 0)),
        )
    else:
        kernel = _ffn_kernel_streamed
        dim_sem = ("parallel", "arbitrary")
        grid_spec = pltpu.PrefetchScalarGridSpec(
            num_scalar_prefetch=0,
            grid=(n_m, n_h),
            in_specs=[
                pl.BlockSpec((tm, C), lambda i, h: (i, 0)),    # x rows
                pl.BlockSpec((C, th), lambda i, h: (0, h)),    # W1 column tile
                pl.BlockSpec((1, th), lambda i, h: (0, h)),    # b1 tile
                pl.BlockSpec((th, C), lambda i, h: (h, 0)),    # W2 row tile
                pl.BlockSpec((1, C), lambda i, h: (0, 0)),     # b2 (resident)
            ],
            out_specs=pl.BlockSpec((tm, C), lambda i, h: (i, 0)),
            scratch_shapes=[pltpu.VMEM((tm, C), jnp.float32)],
        )

    out = pl.pallas_call(
        kernel,
        out_shape=jax.ShapeDtypeStruct((M, C), out_dtype),
        grid_spec=grid_spec,
        compiler_params=pltpu.CompilerParams(
            dimension_semantics=dim_sem,
            vmem_limit_bytes=vmem_limit),
        cost_estimate=pl.CostEstimate(
            flops=flops, transcendentals=0, bytes_accessed=bytes_accessed),
    )(x2d, w1b, b1f, w2b, b2f)

    return out.reshape(B, T, C)


def init_params(key, n_embd):
    """Deterministic init mimicking nn.Linear's default U(-1/sqrt(fan_in), +)."""
    hidden = 4 * n_embd
    k1, k2, k3, k4 = jax.random.split(key, 4)
    s1 = 1.0 / jnp.sqrt(n_embd)
    s2 = 1.0 / jnp.sqrt(hidden)
    w1 = jax.random.uniform(k1, (n_embd, hidden), jnp.float32, -s1, s1)
    b1 = jax.random.uniform(k2, (1, hidden), jnp.float32, -s1, s1)
    w2 = jax.random.uniform(k3, (hidden, n_embd), jnp.float32, -s2, s2)
    b2 = jax.random.uniform(k4, (1, n_embd), jnp.float32, -s2, s2)
    return w1, b1, w2, b2


def _reference(x, w1, b1, w2, b2):
    """Pure-JAX reference with the same bf16-matmul / f32-accumulate recipe."""
    B, T, C = x.shape
    xb = x.reshape(-1, C).astype(jnp.bfloat16)
    h = jnp.maximum(
        jnp.dot(xb, w1.astype(jnp.bfloat16),
                preferred_element_type=jnp.float32) + b1, 0.0)
    y = jnp.dot(h.astype(jnp.bfloat16), w2.astype(jnp.bfloat16),
                preferred_element_type=jnp.float32) + b2
    return y.reshape(B, T, C)


if __name__ == "__main__":
    key = jax.random.PRNGKey(0)
    B, T, n_embd = 2, 8, 32
    dropout = 0.1  # inference mode -> identity

    kx, kp, kx2, kp2 = jax.random.split(key, 4)

    # --- resident-weights path (default sizing) ---
    x = jax.random.normal(kx, (B, T, n_embd), jnp.float32)
    params = init_params(kp, n_embd)
    y = jax.block_until_ready(feedforward(x, *params))
    ref = _reference(x, *params)
    assert y.shape == (B, T, n_embd)
    assert jnp.allclose(y, ref, atol=1e-2, rtol=1e-2)

    # --- streamed (hidden-dim tiled) path, forced small tiles ---
    n_embd2 = 64  # hidden = 256 -> two 128-wide hidden tiles
    x2 = jax.random.normal(kx2, (B, T, n_embd2), jnp.float32)
    params2 = init_params(kp2, n_embd2)
    y2 = jax.block_until_ready(feedforward(x2, *params2, force_tm=8, force_th=128))
    ref2 = _reference(x2, *params2)
    assert y2.shape == (B, T, n_embd2)
    assert jnp.allclose(y2, ref2, atol=1e-2, rtol=1e-2)

    print("KERNEL_OK")
</pallas_src>

<mosaic_0001>
module attributes {stable_mosaic.version = 11 : i64} {
  func.func @_ffn_kernel_resident(%arg0: i32, %arg1: memref<8x32xf32, #tpu.memory_space<vmem>>, %arg2: memref<32x128xbf16, #tpu.memory_space<vmem>>, %arg3: memref<1x128xf32, #tpu.memory_space<vmem>>, %arg4: memref<128x32xbf16, #tpu.memory_space<vmem>>, %arg5: memref<1x32xf32, #tpu.memory_space<vmem>>, %arg6: memref<8x32xf32, #tpu.memory_space<vmem>>) attributes {dimension_semantics = [#tpu.dimension_semantics<parallel>], iteration_bounds = array<i64: 2>, scalar_prefetch = 0 : i64, scratch_operands = 0 : i64, tpu.core_type = #tpu.core_type<tc>, window_params = [{transform_indices = @transform_0, window_bounds = array<i64: 8, 32>}, {pipeline_mode = #tpu.pipeline_mode<synchronous>, transform_indices = @transform_1, window_bounds = array<i64: 32, 128>}, {pipeline_mode = #tpu.pipeline_mode<synchronous>, transform_indices = @transform_2, window_bounds = array<i64: 1, 128>}, {pipeline_mode = #tpu.pipeline_mode<synchronous>, transform_indices = @transform_3, window_bounds = array<i64: 128, 32>}, {pipeline_mode = #tpu.pipeline_mode<synchronous>, transform_indices = @transform_4, window_bounds = array<i64: 1, 32>}, {transform_indices = @transform_5, window_bounds = array<i64: 8, 32>}]} {
    %c0 = arith.constant 0 : index
    %c0_0 = arith.constant 0 : index
    %0 = vector.load %arg1[%c0, %c0_0] : memref<8x32xf32, #tpu.memory_space<vmem>>, vector<8x32xf32>
    %1 = arith.truncf %0 : vector<8x32xf32> to vector<8x32xbf16>
    %c0_1 = arith.constant 0 : index
    %c0_2 = arith.constant 0 : index
    %2 = vector.load %arg2[%c0_1, %c0_2] : memref<32x128xbf16, #tpu.memory_space<vmem>>, vector<32x128xbf16>
    %cst = arith.constant dense<0.000000e+00> : vector<8x128xf32>
    %3 = tpu.matmul %1, %2, %cst {dimension_numbers = #tpu.dot_dimension_numbers<[1], [0], [0], [1], [0, 0, 1, 1], [], []>} : vector<8x32xbf16>, vector<32x128xbf16>, vector<8x128xf32> -> vector<8x128xf32>
    %c0_3 = arith.constant 0 : index
    %c0_4 = arith.constant 0 : index
    %4 = vector.load %arg3[%c0_3, %c0_4] : memref<1x128xf32, #tpu.memory_space<vmem>>, vector<1x128xf32>
    %5 = vector.broadcast %4 : vector<1x128xf32> to vector<8x128xf32>
    %6 = arith.addf %3, %5 : vector<8x128xf32>
    %cst_5 = arith.constant 0.000000e+00 : f32
    %7 = vector.broadcast %cst_5 : f32 to vector<8x128xf32>
    %8 = arith.maximumf %6, %7 : vector<8x128xf32>
    %9 = arith.truncf %8 : vector<8x128xf32> to vector<8x128xbf16>
    %c0_6 = arith.constant 0 : index
    %c0_7 = arith.constant 0 : index
    %10 = vector.load %arg4[%c0_6, %c0_7] : memref<128x32xbf16, #tpu.memory_space<vmem>>, vector<128x32xbf16>
    %cst_8 = arith.constant dense<0.000000e+00> : vector<8x32xf32>
    %11 = tpu.matmul %9, %10, %cst_8 {dimension_numbers = #tpu.dot_dimension_numbers<[1], [0], [0], [1], [0, 0, 1, 1], [], []>} : vector<8x128xbf16>, vector<128x32xbf16>, vector<8x32xf32> -> vector<8x32xf32>
    %c0_9 = arith.constant 0 : index
    %c0_10 = arith.constant 0 : index
    %12 = vector.load %arg5[%c0_9, %c0_10] : memref<1x32xf32, #tpu.memory_space<vmem>>, vector<1x32xf32>
    %13 = vector.broadcast %12 : vector<1x32xf32> to vector<8x32xf32>
    %14 = arith.addf %11, %13 : vector<8x32xf32>
    %c0_11 = arith.constant 0 : index
    %c0_12 = arith.constant 0 : index
    %15 = vector.load %arg6[%c0_11, %c0_12] : memref<8x32xf32, #tpu.memory_space<vmem>>, vector<8x32xf32>
    tpu.vector_store %arg6[%c0_11, %c0_12], %14 {strides = array<i32>} : memref<8x32xf32, #tpu.memory_space<vmem>>, vector<8x32xf32>,
    return
  }
  func.func @transform_0(%arg0: i32) -> (i32, i32) {
    %c0_i32 = arith.constant 0 : i32
    %c0_i32_0 = arith.constant 0 : i32
    return %arg0, %c0_i32 : i32, i32
  }
  func.func @transform_1(%arg0: i32) -> (i32, i32) {
    %c0_i32 = arith.constant 0 : i32
    %c0_i32_0 = arith.constant 0 : i32
    %c0_i32_1 = arith.constant 0 : i32
    return %c0_i32, %c0_i32_0 : i32, i32
  }
  func.func @transform_2(%arg0: i32) -> (i32, i32) {
    %c0_i32 = arith.constant 0 : i32
    %c0_i32_0 = arith.constant 0 : i32
    %c0_i32_1 = arith.constant 0 : i32
    return %c0_i32, %c0_i32_0 : i32, i32
  }
  func.func @transform_3(%arg0: i32) -> (i32, i32) {
    %c0_i32 = arith.constant 0 : i32
    %c0_i32_0 = arith.constant 0 : i32
    %c0_i32_1 = arith.constant 0 : i32
    return %c0_i32, %c0_i32_0 : i32, i32
  }
  func.func @transform_4(%arg0: i32) -> (i32, i32) {
    %c0_i32 = arith.constant 0 : i32
    %c0_i32_0 = arith.constant 0 : i32
    %c0_i32_1 = arith.constant 0 : i32
    return %c0_i32, %c0_i32_0 : i32, i32
  }
  func.func @transform_5(%arg0: i32) -> (i32, i32) {
    %c0_i32 = arith.constant 0 : i32
    %c0_i32_0 = arith.constant 0 : i32
    return %arg0, %c0_i32 : i32, i32
  }
}

</mosaic_0001>

<bundles_post_ra>
// kernel: tpu_custom_call.1
= control target key start
LH: loop header
LB: loop body
LE: loop exit
PB: predicated region body
PF: predicated region fallthrough
CT: control target
= control target key end

     0   :  { %10 = vsyncpa [#allocation3], 0  ;;  %s826_s0 = inlined_call_operand.vmem [shape: f32[16,32], index: 0, kind: input, shape index: {}]   ;;  %s827_s1 = inlined_call_operand.vmem [shape: bf16[32,128], index: 1, kind: input, shape index: {}]   ;;  %s828_s2 = inlined_call_operand.vmem [shape: f32[1,128], index: 2, kind: input, shape index: {}]   ;;  %s829_s3 = inlined_call_operand.vmem [shape: bf16[128,32], index: 3, kind: input, shape index: {}]   ;;  %s830_s4 = inlined_call_operand.vmem [shape: f32[1,32], index: 4, kind: input, shape index: {}]   ;;  %s831_s5 = inlined_call_operand.hbm [shape: f32[16,32], index: 5, kind: output, shape index: {}]  }
   0x1   :  { %12 = vsyncpa [#allocation3 + $0x1], 0  ;;  %s688_s18 = smov 0   ;;  %s690_s19 = smov 0  }
   0x2   :  { %s692_s20 = smov 0   ;;  %s694_s21 = smov 0  }
   0x3 LB: > { %s709_s22 = sadd.s32 4294967295, %s653_s21   ;;  %s477_s23 = sadd.s32 4294967294, %s653_s21   ;;  %s653_s21 = sphi %s694_s21, %s837_s21   ;;  %s649_s20 = sphi %s692_s20, %s836_s20   ;;  %s645_s19 = sphi %s690_s19, %s835_s19   ;;  %s641_s18 = sphi %s688_s18, %s834_s18  }
   0x4   : > { %s713_s24 = sadd.s32 1, %s653_s21   ;;  %s135_s25 = sadd.s32 1, %s649_s20 }
   0x5   : > { %s132_s26 = ssub.s32 %s653_s21, %s713_s24  ;;  %p145_p0 = scmp.ne.s32.totalorder %s649_s20, %s645_s19 }
   0x6   : > { %p133_p1 = scmp.eq.s32.totalorder %s132_s26, 0  ;;  %p146_p2 = scmp.eq.s32.totalorder %s709_s22, 1 }
   0x7   : > { %p151_p3 = scmp.ne.s32.totalorder %s645_s19, %s641_s18  ;;  %p152_p4 = scmp.eq.s32.totalorder %s477_s23, 1 }
   0x8   : > { %s724_s27 = scalar_select %p133_p1, %s649_s20, %s135_s25  }
   0x9   : > { %p726_p5 = por %p146_p2, %p145_p0  ;;  %p730_p6 = por %p152_p4, %p151_p3 }
   0xa   : > { %p480_p7 = scmp.ge.s32.totalorder %s653_s21, 1  ;;  %p189_p8 = scmp.lt.s32.totalorder %s653_s21, 3 }
   0xc   : > { %p190_p9 = pnand %p480_p7, %p189_p8 }
   0xd   : > { %v581_v0 = vld [vmem:[%s827_s1] sm:$0xff] (!%p190_p9)   ;;  %v655_v1 = vmov (!%p190_p9), 0.0   ;;  %v582_v2 = vld [vmem:[%s827_s1 + $0x8] sm:$0xff] (!%p190_p9)   ;;  %vm656_vm0 = vmmov (!%p190_p9), 0   ;;  %p216_p10 = scmp.lt.s32.totalorder (!%p190_p9), %s709_s22, 1  ;;  %vm246_vm1 = vcmask (!%p190_p9), 261120  }
   0xe   : > { %193 = sbr.rel (%p190_p9) target bundleno = 474 (0x1da), region = 40  ;;  %512 = vmatprep.subr.bf16.mxu0 (!%p190_p9), %v655_v1  ;;  %520 = vmatprep.subr.bf16.mxu1 (!%p190_p9), %v655_v1  ;;  %v583_v3 = vld [vmem:[%s829_s3] sm:$0xff] (!%p190_p9)   ;;  %v584_v4 = vld [vmem:[%s829_s3 + $0x8] sm:$0xff] (!%p190_p9)   ;;  %v585_v6 = vld [vmem:[%s829_s3 + $0x10] sm:$0xff] (!%p190_p9)   ;;  %s213_s16 = sand.u32 (!%p190_p9), 1, %s645_s19  }
   0xf   : > { %513 = vmatpush3.bf16.msra.mxu0 (!%p190_p9), %v581_v0  ;;  %516 = vmatprep.mubr.msk.bf16.mxu0 (!%p190_p9), %vm656_vm0, %v655_v1  ;;  %v586_v8 = vld [vmem:[%s829_s3 + $0x18] sm:$0xff] (!%p190_p9)   ;;  %v587_v9 = vld [vmem:[%s829_s3 + $0x20] sm:$0xff] (!%p190_p9)   ;;  %v588_v10 = vld [vmem:[%s829_s3 + $0x28] sm:$0xff] (!%p190_p9)   ;;  %s497_s26 = sshll.u32 (!%p190_p9), %s709_s22, 7 }
  0x10   : > { %514 = vmatprep.subr.bf16.mxu0 (!%p190_p9), %v655_v1  ;;  %536 = vmatprep.mubr.msk.bf16.mxu1 (!%p190_p9), %vm656_vm0, %v655_v1  ;;  %v589_v11 = vld [vmem:[%s829_s3 + $0x30] sm:$0xff] (!%p190_p9)   ;;  %v590_v12 = vld [vmem:[%s829_s3 + $0x38] sm:$0xff] (!%p190_p9)   ;;  %v483_v13 = vld [vmem:[%s828_s2] ss:$0 sm:$0xff] (!%p190_p9)  ;;  %s783_s9 = scalar_lea.hbm (!%p190_p9), %s831_s5, %s497_s26 }
  0x11   : > { %521 = vmatpush3.bf16.msra.mxu1 (!%p190_p9), %v583_v3  ;;  %v487_v21 = vld [vmem:[%s830_s4] ss:$0 sm:$0xff] (!%p190_p9) }
  0x12   : > { %522 = vmatprep.subr.bf16.mxu1 (!%p190_p9), %v655_v1 }
  0x13   : > { %515 = vmatpush3.bf16.msra.mxu0 (!%p190_p9), %v582_v2 }
  0x15   : > { %s217_s11 = scalar_select %p216_p10, %s709_s22, 1  ;;  %523 = vmatpush3.bf16.msra.mxu1 %v584_v4 }
  0x16   : > { %524 = vmatprep.subr.bf16.mxu1 %v655_v1  ;;  %s405_s22 = scalar_lea.sflag [#allocation3], %s213_s16 }
  0x17   : > { %s482_s14 = sshll.u32 %s217_s11, 3  ;;  %s657_s11 = smov [#allocation2]  }
  0x18   : > { %s219_s17 = scalar_lea.vmem %s826_s0, %s482_s14  ;;  %s595_s12 = sshll.u32 %s657_s11, 4  ;;  %s596_s12 = int_to_ptr.vmem [resolvable:$false] %s595_s12 }
  0x19   : > { %v221_v5 = vld [vmem:[%s219_s17] sm:$0xff]  ;;  %525 = vmatpush3.bf16.msra.mxu1 %v585_v6  ;;  %s481_s17 = sshll.u32 %s213_s16, 3  ;;  %s597_s13 = scalar_lea.vmem %s596_s12, 256 }
  0x1a   : > { %v222_v7 = vpack.c.bf16 %v221_v5, %v221_v5  ;;  %526 = vmatprep.subr.bf16.mxu1 %v655_v1  ;;  %s215_s30 = scalar_lea.vmem [#allocation2], %s481_s17 }
  0x1b   : > { %s418_s6 = sshll.u32 %s215_s30, 4  ;;  %s785_s6 = int_to_ptr.vmem [resolvable:$true] %s418_s6 }
  0x1c   : > { %517 = vmatmul.mubr.msk.bf16.vlgmr.msra.gmra.mrb[0].mxu0 %vm246_vm1, %v222_v7  ;;  %s591_s10 = scalar_lea.vmem %s785_s6, 128  ;;  %p598_p0 = scmp.lt.s32.totalorder %s785_s6, %s596_s12 }
  0x1d   : > { %527 = vmatpush3.bf16.msra.mxu1 %v586_v8  ;;  %p592_p11 = scmp.ne.s32.totalorder %s785_s6, %s591_s10  ;;  %p599_p1 = scmp.lt.s32.totalorder %s597_s13, %s591_s10 }
  0x1e   : > { %528 = vmatprep.subr.bf16.mxu1 %v655_v1 }
  0x1f   : > { %p593_p12 = pnand %p592_p11, %p726_p5  ;;  %p600_p2 = por %p599_p1, %p598_p0 }
  0x21   : > { %529 = vmatpush3.bf16.msra.mxu1 %v587_v9  ;;  %p594_p13 = pneg %p593_p12 }
  0x22   : > { %530 = vmatprep.subr.bf16.mxu1 %v655_v1 }
  0x23   : > { %p601_p3 = pnand %p600_p2, %p594_p13 }
  0x25   : > { %531 = vmatpush3.bf16.msra.mxu1 %v588_v10 }
  0x26   : > { %532 = vmatprep.subr.bf16.mxu1 %v655_v1 }
  0x29   : > { %533 = vmatpush3.bf16.msra.mxu1 %v589_v11 }
  0x2a   : > { %534 = vmatprep.subr.bf16.mxu1 %v655_v1 }
  0x2d   : > { %535 = vmatpush3.bf16.msra.mxu1 %v590_v12 }
  0xef   : > { %v284_v14 = vpop.f32.mrb[0].mxu0 }
  0xf0   : > { %v285_v15 = vadd.f32 %v483_v13, %v284_v14  ;;  %v518_v16 = vpop.f32.mrb[1].mxu0 }
  0xf1   : > { %v287_v17 = vpop.f32.mrb[2].mxu0 }
  0xf2   : > { %v290_v18 = vmax.f32 %v285_v15, 0.0  ;;  %v519_v19 = vpop.f32.mrb[3].mxu0 }
  0xf4   : > { %v291_v20 = vpack.c.bf16 %v290_v18, %v290_v18 }
  0xf6   : > { %537 = vmatmul.mubr.bf16.vlgmr.msra.gmra.mrb[0].mxu1 %v291_v20 }
 0x1c9   : > { %v397_v22 = vpop.f32.mrb[0].mxu1 }
 0x1ca   : > { %v398_v23 = vadd.f32 %v487_v21, %v397_v22  ;;  %v538_v24 = vpop.f32.mrb[1].mxu1 }
 0x1cb   : > { %v400_v25 = vpop.f32.mrb[2].mxu1 }
 0x1cc   : > { %v539_v26 = vpop.f32.mrb[3].mxu1  ;;  %403 = vst.msk [vmem:[%s215_s30] sm:$0xff] %vm246_vm1, %v398_v23 }
 0x1cd   : > { %604 = shalt.err (!%p601_p3)
}
 0x1ce   : > { %s605_s14 = scalar_lea.hbm %s783_s9, 128  ;;  %s609_s17 = scalar_lea.hbm %s831_s5, 256 }
 0x1cf   : > { %p606_p4 = scmp.ne.s32.totalorder %s783_s9, %s605_s14  ;;  %p610_p9 = scmp.lt.u32.totalorder %s783_s9, %s831_s5 }
 0x1d0   : > { %p611_p10 = scmp.lt.u32.totalorder %s609_s17, %s605_s14  ;;  %p613_p12 = scmp.lt.u32.totalorder %s605_s14, %s783_s9 }
 0x1d1   : > { %p607_p7 = pnand %p606_p4, %p726_p5 }
 0x1d2   : > { %p612_p11 = por %p611_p10, %p610_p9 }
 0x1d3   : > { %p608_p8 = pneg %p607_p7 }
 0x1d4   : > { %p614_p13 = por %p613_p12, %p612_p11 }
 0x1d6   : > { %p615_p0 = pnand %p614_p13, %p608_p8 }
 0x1d8   : > { %618 = shalt.err (!%p615_p0)
}
 0x1d9   : > { %540 = dma.vmem_to_hbm [thread:$0]  (%p726_p5), %s785_s6, 128, %s783_s9, %s405_s22  }
 0x1da PF: > { %p546_p1 = scmp.ge.s32.totalorder %s653_s21, 2  ;;  %s430_s26 = sand.u32 1, %s641_s18  }
 0x1db   : > { %s431_s30 = scalar_lea.sflag [#allocation3], %s430_s26 }
 0x1dc   : > { %p543_p2 = pnand %p546_p1, %p730_p6 }
 0x1de   : > { %636 = dma.done.wait (!%p543_p2), %s431_s30, 128  }
 0x1df   : > { %638 = vsyncadd (!%p543_p2), %s431_s30, 4294967168  ;;  %p15_p3 = scmp.ge.s32.totalorder %s713_s24, 4   ;;  %s834_s18 = smov %s645_s19 }
 0x1e0   : > { %s835_s19 = smov %s649_s20  ;;  %s836_s20 = smov %s724_s27 }
 0x1e1   : > { %s837_s21 = smov %s713_s24  ;;  %17 = sbr.rel (!%p15_p3) target bundleno = 3 (0x3), region = 75 }
 0x1e8   :  { %436 = vsyncpa [#allocation3], 1 }
 0x1e9   :  { %438 = vsyncpa [#allocation3 + $0x1], 1 }

</bundles_post_ra>
